<compile_context>
chip_gen: v7x
topology: tpu7x:2x2x1
jax: 0.10.0
libtpu: 0.0.40
codegen_flags: <defaults>
</compile_context>

<pallas_src>
import functools

import numpy as np
import jax
import jax.numpy as jnp
from jax import lax
from jax.experimental import pallas as pl
from jax.experimental.pallas import tpu as pltpu


# ----------------------------------------------------------------------------
# Pallas kernel: entire forward pass (both branches + fc1 + relu + normalize)
# ----------------------------------------------------------------------------
def actrank_kernel(xa_ref, xr_ref, wa_ref, ba_ref, wih_ref, bih_ref,
                   whh_ref, bhh_ref, wfc_ref, bfc_ref, o_ref):
    B8 = xa_ref.shape[0]                  # sublane-padded batch (multiple of 8)
    E = whh_ref.shape[0]                  # emd_dim (GRU hidden size)
    G = whh_ref.shape[1] // 3             # per-gate lane stride (E or 128)
    T = xr_ref.shape[0] // B8             # sequence length

    # ---- act branch: Linear + ReLU (bf16 operands, f32 accumulate) ----------
    h1 = jnp.maximum(
        jnp.dot(xa_ref[...], wa_ref[...], preferred_element_type=jnp.float32)
        + ba_ref[...],
        0.0)                                                     # (B8, E) f32

    # ---- grunet branch: single-layer GRU over T steps ------------------------
    # Hoisted input projections: ONE MXU call for all timesteps; input-gate
    # biases folded in.  xr_ref rows are t-major (row = t*B8 + b).
    x_proj = (jnp.dot(xr_ref[...], wih_ref[...],
                      preferred_element_type=jnp.float32)
              + bih_ref[...])                                    # (T*B8, 3G) f32

    whh = whh_ref[...]                                           # (E, 3G) bf16
    bhh = bhh_ref[...]                                           # (1, 3G) f32

    h = jnp.zeros((B8, E), jnp.float32)
    # Fully unrolled recurrence (T static & small): concrete indices -> every
    # per-step slice is a static, sublane-aligned 8-row window.
    for t in range(T):
        xp = x_proj[t * B8:(t + 1) * B8, :]                      # (B8, 3G)
        hh = (jnp.dot(h.astype(whh.dtype), whh,
                      preferred_element_type=jnp.float32)
              + bhh)                                             # (B8, 3G) f32
        # r / z / n gate slabs start at lane offsets 0, G, 2G (128-aligned on
        # v6e/v7x).  Gate math stays in f32 (EUP sigmoid/tanh, VPU combine).
        r = jax.nn.sigmoid(xp[:, 0:E] + hh[:, 0:E])
        z = jax.nn.sigmoid(xp[:, G:G + E] + hh[:, G:G + E])
        n = jnp.tanh(xp[:, 2 * G:2 * G + E] + r * hh[:, 2 * G:2 * G + E])
        h = (1.0 - z) * n + z * h                                # (B8, E) f32

    # ---- cat + fc1 + ReLU: single fused (B8, 2E) @ (2E, F) matmul ------------
    hc = jnp.concatenate([h1, h], axis=1).astype(wfc_ref.dtype)  # (B8, 2E) bf16
    y = (jnp.dot(hc, wfc_ref[...], preferred_element_type=jnp.float32)
         + bfc_ref[...])                                         # (B8, F) f32
    y = jnp.maximum(y, 0.0)

    # ---- F.normalize(p=2, dim=1), eps=1e-12: rsqrt with eps^2 clamp ----------
    ss = jnp.sum(y * y, axis=1, keepdims=True)
    o_ref[...] = y * lax.rsqrt(jnp.maximum(ss, 1e-24))


# ----------------------------------------------------------------------------
# One-time parameter preparation (fusion / padding / bf16 cast) -- done OUTSIDE
# the per-call jit so per-invocation dispatch is essentially just pallas_call.
# ----------------------------------------------------------------------------
def _default_gate_stride(E):
    """128-lane gate slabs on v6e/v7x; keep 3E unpadded on v5-class chips."""
    try:
        kind = jax.devices()[0].device_kind.lower()
    except Exception:  # pragma: no cover - non-TPU fallback
        return E
    if "v6" in kind or "v7" in kind:
        return max(E, 128)
    return E


def prepare_params(params, gate_stride=None):
    (wa, ba, wih, whh, bih, bhh, wfc, bfc) = params
    E = whh.shape[-1]
    bf = jnp.bfloat16
    G = _default_gate_stride(E) if gate_stride is None else gate_stride

    def pad_gate(m):
        pad = G - m.shape[-1]
        if pad == 0:
            return m
        return jnp.pad(m, [(0, 0)] * (m.ndim - 1) + [(0, pad)])

    # Fuse GRU gate weights/biases [r | z | n] along lanes; each gate block is
    # padded to stride G (padded lanes are never read back by the kernel).
    wih_f = jnp.concatenate([pad_gate(wih[g]) for g in range(3)], axis=1).astype(bf)
    whh_f = jnp.concatenate([pad_gate(whh[g]) for g in range(3)], axis=1).astype(bf)
    bih_f = jnp.concatenate([pad_gate(bih[g]) for g in range(3)], axis=1).astype(jnp.float32)
    bhh_f = jnp.concatenate([pad_gate(bhh[g]) for g in range(3)], axis=1).astype(jnp.float32)

    # Pre-fuse fc1 into a single (2E, F) weight for the lane-concatenated [h1|h].
    wfc_f = jnp.concatenate([wfc[0], wfc[1]], axis=0).astype(bf)

    prepared = (wa.astype(bf), ba.astype(jnp.float32), wih_f, bih_f,
                whh_f, bhh_f, wfc_f, bfc.astype(jnp.float32))
    return jax.tree_util.tree_map(jax.block_until_ready,
                                  jax.device_put(prepared))


# ----------------------------------------------------------------------------
# Per-call wrapper: x reshape/pad + pallas_call, all inside one jit
# ----------------------------------------------------------------------------
@functools.partial(jax.jit, static_argnums=(2,))
def actrank_forward(x, prepared, act_dim):
    (wa_b, ba_f, wih_f, bih_f, whh_f, bhh_f, wfc_f, bfc_f) = prepared
    B, C, T, W = x.shape
    E = whh_f.shape[0]
    F = bfc_f.shape[-1]
    bf = jnp.bfloat16
    B8 = ((B + 7) // 8) * 8          # sublane-aligned batch

    # x_activation: (B, C, T, act_dim) -> flatten like PyTorch .reshape(B, -1),
    # zero-pad to B8 rows.
    x_act = x[:, :, :, :act_dim].reshape(B, C * T * act_dim).astype(bf)
    x_act = jnp.pad(x_act, ((0, B8 - B), (0, 0)))                 # (B8, Din_a)

    # x_rank scalar: (B, C, T) -> time-major (T, B8, C) with zero-padded rows,
    # then flat rows (row = t*B8 + b) so each step's slice is 8-row aligned.
    x_rank = jnp.transpose(x[:, :, :, act_dim], (2, 0, 1))        # (T, B, C)
    x_rank = jnp.pad(x_rank, ((0, 0), (0, B8 - B), (0, 0)))       # (T, B8, C)
    x_rank = x_rank.reshape(T * B8, C).astype(bf)

    din_a = x_act.shape[1]
    G3 = whh_f.shape[1]
    cost = pl.CostEstimate(
        flops=(2 * B8 * din_a * E              # act Linear
               + 2 * (T * B8) * C * G3         # hoisted input projections
               + T * 2 * B8 * E * G3           # recurrent hidden matmuls
               + 2 * B8 * (2 * E) * F),        # fused fc1
        transcendentals=T * B8 * 3 * E + B8,
        bytes_accessed=((x_act.size + x_rank.size + wa_b.size + wfc_f.size
                         + wih_f.size + whh_f.size) * 2
                        + (ba_f.size + bih_f.size + bhh_f.size + bfc_f.size) * 4
                        + B8 * F * 4),
    )

    vmem = pl.BlockSpec(memory_space=pltpu.MemorySpace.VMEM)
    out = pl.pallas_call(
        actrank_kernel,
        out_shape=jax.ShapeDtypeStruct((B8, F), jnp.float32),
        in_specs=[vmem] * 10,
        out_specs=vmem,
        cost_estimate=cost,
        compiler_params=pltpu.CompilerParams(
            vmem_limit_bytes=32 * 1024 * 1024),
    )(x_act, x_rank, wa_b, ba_f, wih_f, bih_f, whh_f, bhh_f, wfc_f, bfc_f)

    # Drop the zero-padded batch rows (finite garbage, never aliased with real
    # rows since the GRU / matmuls have no cross-row interaction).
    return out[:B]


# ----------------------------------------------------------------------------
# Pure-JAX reference: same math / same matmul precision (bf16 operands, f32
# accumulation), per-gate (unfused, unpadded) GRU weights to validate both the
# fusion algebra and the batch/lane padding.
# ----------------------------------------------------------------------------
def actrank_reference(x, params, act_dim):
    (wa, ba, wih, whh, bih, bhh, wfc, bfc) = params
    B, C, T, W = x.shape
    E = whh.shape[-1]
    bf = jnp.bfloat16

    x_act = x[:, :, :, :act_dim].reshape(B, C * T * act_dim).astype(bf)
    h1 = jnp.maximum(
        jnp.dot(x_act, wa.astype(bf), preferred_element_type=jnp.float32) + ba,
        0.0)

    xr = jnp.transpose(x[:, :, :, act_dim], (2, 0, 1)).astype(bf)   # (T, B, C)
    h = jnp.zeros((B, E), jnp.float32)
    for t in range(T):
        xt = xr[t]
        hb = h.astype(bf)
        r = jax.nn.sigmoid(
            jnp.dot(xt, wih[0].astype(bf), preferred_element_type=jnp.float32)
            + bih[0]
            + jnp.dot(hb, whh[0].astype(bf), preferred_element_type=jnp.float32)
            + bhh[0])
        z = jax.nn.sigmoid(
            jnp.dot(xt, wih[1].astype(bf), preferred_element_type=jnp.float32)
            + bih[1]
            + jnp.dot(hb, whh[1].astype(bf), preferred_element_type=jnp.float32)
            + bhh[1])
        n = jnp.tanh(
            jnp.dot(xt, wih[2].astype(bf), preferred_element_type=jnp.float32)
            + bih[2]
            + r * (jnp.dot(hb, whh[2].astype(bf),
                           preferred_element_type=jnp.float32) + bhh[2]))
        h = (1.0 - z) * n + z * h

    y = jnp.maximum(
        jnp.dot(h1.astype(bf), wfc[0].astype(bf),
                preferred_element_type=jnp.float32)
        + jnp.dot(h.astype(bf), wfc[1].astype(bf),
                  preferred_element_type=jnp.float32)
        + bfc,
        0.0)
    ss = jnp.sum(y * y, axis=1, keepdims=True)
    return y * lax.rsqrt(jnp.maximum(ss, 1e-24))


# ----------------------------------------------------------------------------
if __name__ == "__main__":
    # Small shapes consistent with the forward pass.
    B, C, T = 2, 4, 8
    act_dim = 16
    W = act_dim + 1          # last dim holds [activation features | rank scalar]
    emd_dim = 32
    feature_dim = 64
    Din_a = C * T * act_dim  # flattened activation-branch input

    key = jax.random.PRNGKey(0)
    keys = jax.random.split(key, 9)

    def init(k, shape, fan_in):
        return (jax.random.uniform(k, shape, jnp.float32, -1.0, 1.0)
                / np.sqrt(fan_in)).astype(jnp.float32)

    # act branch (Linear Din_a -> emd_dim)
    wa = init(keys[0], (Din_a, emd_dim), Din_a)
    ba = init(keys[1], (1, emd_dim), Din_a)
    # grunet branch (GRU: input C, hidden emd_dim); gates stacked [r, z, n]
    wih = init(keys[2], (3, C, emd_dim), C)
    whh = init(keys[3], (3, emd_dim, emd_dim), emd_dim)
    bih = init(keys[4], (3, 1, emd_dim), emd_dim)
    bhh = init(keys[5], (3, 1, emd_dim), emd_dim)
    # fc1 (Linear 2*emd_dim -> feature_dim), split into the two concat halves
    wfc = init(keys[6], (2, emd_dim, feature_dim), 2 * emd_dim)
    bfc = init(keys[7], (1, feature_dim), 2 * emd_dim)

    params = (wa, ba, wih, whh, bih, bhh, wfc, bfc)

    # One-time weight fusion / padding / bf16 cast (outside the per-call jit).
    prepared = prepare_params(params)

    # Deterministic example input, NCHW.
    x = jax.random.normal(keys[8], (B, C, T, W), jnp.float32)

    out = actrank_forward(x, prepared, act_dim)
    out = jax.block_until_ready(out)

    ref = actrank_reference(x, params, act_dim)
    np.testing.assert_allclose(np.asarray(out), np.asarray(ref),
                               rtol=2e-3, atol=2e-3)

    print("KERNEL_OK")
</pallas_src>

<mosaic_0001>
module attributes {stable_mosaic.version = 11 : i64} {
  func.func @actrank_kernel(%arg0: memref<8x512xbf16, #tpu.memory_space<vmem>>, %arg1: memref<64x4xbf16, #tpu.memory_space<vmem>>, %arg2: memref<512x32xbf16, #tpu.memory_space<vmem>>, %arg3: memref<1x32xf32, #tpu.memory_space<vmem>>, %arg4: memref<4x96xbf16, #tpu.memory_space<vmem>>, %arg5: memref<1x96xf32, #tpu.memory_space<vmem>>, %arg6: memref<32x96xbf16, #tpu.memory_space<vmem>>, %arg7: memref<1x96xf32, #tpu.memory_space<vmem>>, %arg8: memref<64x64xbf16, #tpu.memory_space<vmem>>, %arg9: memref<1x64xf32, #tpu.memory_space<vmem>>, %arg10: memref<8x64xf32, #tpu.memory_space<vmem>>) attributes {dimension_semantics = [], scalar_prefetch = 0 : i64, scratch_operands = 0 : i64, tpu.core_type = #tpu.core_type<tc>} {
    %c0 = arith.constant 0 : index
    %c0_0 = arith.constant 0 : index
    %0 = vector.load %arg0[%c0, %c0_0] : memref<8x512xbf16, #tpu.memory_space<vmem>>, vector<8x512xbf16>
    %c0_1 = arith.constant 0 : index
    %c0_2 = arith.constant 0 : index
    %1 = vector.load %arg2[%c0_1, %c0_2] : memref<512x32xbf16, #tpu.memory_space<vmem>>, vector<512x32xbf16>
    %cst = arith.constant dense<0.000000e+00> : vector<8x32xf32>
    %2 = tpu.matmul %0, %1, %cst {dimension_numbers = #tpu.dot_dimension_numbers<[1], [0], [0], [1], [0, 0, 1, 1], [], []>} : vector<8x512xbf16>, vector<512x32xbf16>, vector<8x32xf32> -> vector<8x32xf32>
    %c0_3 = arith.constant 0 : index
    %c0_4 = arith.constant 0 : index
    %3 = vector.load %arg3[%c0_3, %c0_4] : memref<1x32xf32, #tpu.memory_space<vmem>>, vector<1x32xf32>
    %4 = vector.broadcast %3 : vector<1x32xf32> to vector<8x32xf32>
    %5 = arith.addf %2, %4 : vector<8x32xf32>
    %cst_5 = arith.constant 0.000000e+00 : f32
    %6 = vector.broadcast %cst_5 : f32 to vector<8x32xf32>
    %7 = arith.maximumf %5, %6 : vector<8x32xf32>
    %c0_6 = arith.constant 0 : index
    %c0_7 = arith.constant 0 : index
    %8 = vector.load %arg1[%c0_6, %c0_7] : memref<64x4xbf16, #tpu.memory_space<vmem>>, vector<64x4xbf16>
    %c0_8 = arith.constant 0 : index
    %c0_9 = arith.constant 0 : index
    %9 = vector.load %arg4[%c0_8, %c0_9] : memref<4x96xbf16, #tpu.memory_space<vmem>>, vector<4x96xbf16>
    %cst_10 = arith.constant dense<0.000000e+00> : vector<64x96xf32>
    %10 = tpu.matmul %8, %9, %cst_10 {dimension_numbers = #tpu.dot_dimension_numbers<[1], [0], [0], [1], [0, 0, 1, 1], [], []>} : vector<64x4xbf16>, vector<4x96xbf16>, vector<64x96xf32> -> vector<64x96xf32>
    %c0_11 = arith.constant 0 : index
    %c0_12 = arith.constant 0 : index
    %11 = vector.load %arg5[%c0_11, %c0_12] : memref<1x96xf32, #tpu.memory_space<vmem>>, vector<1x96xf32>
    %12 = vector.broadcast %11 : vector<1x96xf32> to vector<64x96xf32>
    %13 = arith.addf %10, %12 : vector<64x96xf32>
    %c0_13 = arith.constant 0 : index
    %c0_14 = arith.constant 0 : index
    %14 = vector.load %arg6[%c0_13, %c0_14] : memref<32x96xbf16, #tpu.memory_space<vmem>>, vector<32x96xbf16>
    %c0_15 = arith.constant 0 : index
    %c0_16 = arith.constant 0 : index
    %15 = vector.load %arg7[%c0_15, %c0_16] : memref<1x96xf32, #tpu.memory_space<vmem>>, vector<1x96xf32>
    %cst_17 = arith.constant 0.000000e+00 : f32
    %16 = vector.broadcast %cst_17 : f32 to vector<8x32xf32>
    %17 = vector.extract_strided_slice %13 {offsets = [0, 0], sizes = [8, 96], strides = [1, 1]} : vector<64x96xf32> to vector<8x96xf32>
    %18 = arith.truncf %16 : vector<8x32xf32> to vector<8x32xbf16>
    %cst_18 = arith.constant dense<0.000000e+00> : vector<8x96xf32>
    %19 = tpu.matmul %18, %14, %cst_18 {dimension_numbers = #tpu.dot_dimension_numbers<[1], [0], [0], [1], [0, 0, 1, 1], [], []>} : vector<8x32xbf16>, vector<32x96xbf16>, vector<8x96xf32> -> vector<8x96xf32>
    %20 = vector.broadcast %15 : vector<1x96xf32> to vector<8x96xf32>
    %21 = arith.addf %19, %20 : vector<8x96xf32>
    %22 = vector.extract_strided_slice %17 {offsets = [0, 0], sizes = [8, 32], strides = [1, 1]} : vector<8x96xf32> to vector<8x32xf32>
    %23 = vector.extract_strided_slice %21 {offsets = [0, 0], sizes = [8, 32], strides = [1, 1]} : vector<8x96xf32> to vector<8x32xf32>
    %24 = arith.addf %22, %23 : vector<8x32xf32>
    %25 = arith.negf %24 : vector<8x32xf32>
    %26 = math.exp %25 : vector<8x32xf32>
    %cst_19 = arith.constant 1.000000e+00 : f32
    %27 = vector.broadcast %cst_19 : f32 to vector<8x32xf32>
    %28 = arith.addf %27, %26 : vector<8x32xf32>
    %29 = arith.divf %27, %28 : vector<8x32xf32>
    %30 = vector.extract_strided_slice %17 {offsets = [0, 32], sizes = [8, 32], strides = [1, 1]} : vector<8x96xf32> to vector<8x32xf32>
    %31 = vector.extract_strided_slice %21 {offsets = [0, 32], sizes = [8, 32], strides = [1, 1]} : vector<8x96xf32> to vector<8x32xf32>
    %32 = arith.addf %30, %31 : vector<8x32xf32>
    %33 = arith.negf %32 : vector<8x32xf32>
    %34 = math.exp %33 : vector<8x32xf32>
    %cst_20 = arith.constant 1.000000e+00 : f32
    %35 = vector.broadcast %cst_20 : f32 to vector<8x32xf32>
    %36 = arith.addf %35, %34 : vector<8x32xf32>
    %37 = arith.divf %35, %36 : vector<8x32xf32>
    %38 = vector.extract_strided_slice %17 {offsets = [0, 64], sizes = [8, 32], strides = [1, 1]} : vector<8x96xf32> to vector<8x32xf32>
    %39 = vector.extract_strided_slice %21 {offsets = [0, 64], sizes = [8, 32], strides = [1, 1]} : vector<8x96xf32> to vector<8x32xf32>
    %40 = arith.mulf %29, %39 : vector<8x32xf32>
    %41 = arith.addf %38, %40 : vector<8x32xf32>
    %42 = math.tanh %41 : vector<8x32xf32>
    %cst_21 = arith.constant 1.000000e+00 : f32
    %43 = vector.broadcast %cst_21 : f32 to vector<8x32xf32>
    %44 = arith.subf %43, %37 : vector<8x32xf32>
    %45 = arith.mulf %44, %42 : vector<8x32xf32>
    %46 = arith.mulf %37, %16 : vector<8x32xf32>
    %47 = arith.addf %45, %46 : vector<8x32xf32>
    %48 = vector.extract_strided_slice %13 {offsets = [8, 0], sizes = [8, 96], strides = [1, 1]} : vector<64x96xf32> to vector<8x96xf32>
    %49 = arith.truncf %47 : vector<8x32xf32> to vector<8x32xbf16>
    %cst_22 = arith.constant dense<0.000000e+00> : vector<8x96xf32>
    %50 = tpu.matmul %49, %14, %cst_22 {dimension_numbers = #tpu.dot_dimension_numbers<[1], [0], [0], [1], [0, 0, 1, 1], [], []>} : vector<8x32xbf16>, vector<32x96xbf16>, vector<8x96xf32> -> vector<8x96xf32>
    %51 = vector.broadcast %15 : vector<1x96xf32> to vector<8x96xf32>
    %52 = arith.addf %50, %51 : vector<8x96xf32>
    %53 = vector.extract_strided_slice %48 {offsets = [0, 0], sizes = [8, 32], strides = [1, 1]} : vector<8x96xf32> to vector<8x32xf32>
    %54 = vector.extract_strided_slice %52 {offsets = [0, 0], sizes = [8, 32], strides = [1, 1]} : vector<8x96xf32> to vector<8x32xf32>
    %55 = arith.addf %53, %54 : vector<8x32xf32>
    %56 = arith.negf %55 : vector<8x32xf32>
    %57 = math.exp %56 : vector<8x32xf32>
    %cst_23 = arith.constant 1.000000e+00 : f32
    %58 = vector.broadcast %cst_23 : f32 to vector<8x32xf32>
    %59 = arith.addf %58, %57 : vector<8x32xf32>
    %60 = arith.divf %58, %59 : vector<8x32xf32>
    %61 = vector.extract_strided_slice %48 {offsets = [0, 32], sizes = [8, 32], strides = [1, 1]} : vector<8x96xf32> to vector<8x32xf32>
    %62 = vector.extract_strided_slice %52 {offsets = [0, 32], sizes = [8, 32], strides = [1, 1]} : vector<8x96xf32> to vector<8x32xf32>
    %63 = arith.addf %61, %62 : vector<8x32xf32>
    %64 = arith.negf %63 : vector<8x32xf32>
    %65 = math.exp %64 : vector<8x32xf32>
    %cst_24 = arith.constant 1.000000e+00 : f32
    %66 = vector.broadcast %cst_24 : f32 to vector<8x32xf32>
    %67 = arith.addf %66, %65 : vector<8x32xf32>
    %68 = arith.divf %66, %67 : vector<8x32xf32>
    %69 = vector.extract_strided_slice %48 {offsets = [0, 64], sizes = [8, 32], strides = [1, 1]} : vector<8x96xf32> to vector<8x32xf32>
    %70 = vector.extract_strided_slice %52 {offsets = [0, 64], sizes = [8, 32], strides = [1, 1]} : vector<8x96xf32> to vector<8x32xf32>
    %71 = arith.mulf %60, %70 : vector<8x32xf32>
    %72 = arith.addf %69, %71 : vector<8x32xf32>
    %73 = math.tanh %72 : vector<8x32xf32>
    %cst_25 = arith.constant 1.000000e+00 : f32
    %74 = vector.broadcast %cst_25 : f32 to vector<8x32xf32>
    %75 = arith.subf %74, %68 : vector<8x32xf32>
    %76 = arith.mulf %75, %73 : vector<8x32xf32>
    %77 = arith.mulf %68, %47 : vector<8x32xf32>
    %78 = arith.addf %76, %77 : vector<8x32xf32>
    %79 = vector.extract_strided_slice %13 {offsets = [16, 0], sizes = [8, 96], strides = [1, 1]} : vector<64x96xf32> to vector<8x96xf32>
    %80 = arith.truncf %78 : vector<8x32xf32> to vector<8x32xbf16>
    %cst_26 = arith.constant dense<0.000000e+00> : vector<8x96xf32>
    %81 = tpu.matmul %80, %14, %cst_26 {dimension_numbers = #tpu.dot_dimension_numbers<[1], [0], [0], [1], [0, 0, 1, 1], [], []>} : vector<8x32xbf16>, vector<32x96xbf16>, vector<8x96xf32> -> vector<8x96xf32>
    %82 = vector.broadcast %15 : vector<1x96xf32> to vector<8x96xf32>
    %83 = arith.addf %81, %82 : vector<8x96xf32>
    %84 = vector.extract_strided_slice %79 {offsets = [0, 0], sizes = [8, 32], strides = [1, 1]} : vector<8x96xf32> to vector<8x32xf32>
    %85 = vector.extract_strided_slice %83 {offsets = [0, 0], sizes = [8, 32], strides = [1, 1]} : vector<8x96xf32> to vector<8x32xf32>
    %86 = arith.addf %84, %85 : vector<8x32xf32>
    %87 = arith.negf %86 : vector<8x32xf32>
    %88 = math.exp %87 : vector<8x32xf32>
    %cst_27 = arith.constant 1.000000e+00 : f32
    %89 = vector.broadcast %cst_27 : f32 to vector<8x32xf32>
    %90 = arith.addf %89, %88 : vector<8x32xf32>
    %91 = arith.divf %89, %90 : vector<8x32xf32>
    %92 = vector.extract_strided_slice %79 {offsets = [0, 32], sizes = [8, 32], strides = [1, 1]} : vector<8x96xf32> to vector<8x32xf32>
    %93 = vector.extract_strided_slice %83 {offsets = [0, 32], sizes = [8, 32], strides = [1, 1]} : vector<8x96xf32> to vector<8x32xf32>
    %94 = arith.addf %92, %93 : vector<8x32xf32>
    %95 = arith.negf %94 : vector<8x32xf32>
    %96 = math.exp %95 : vector<8x32xf32>
    %cst_28 = arith.constant 1.000000e+00 : f32
    %97 = vector.broadcast %cst_28 : f32 to vector<8x32xf32>
    %98 = arith.addf %97, %96 : vector<8x32xf32>
    %99 = arith.divf %97, %98 : vector<8x32xf32>
    %100 = vector.extract_strided_slice %79 {offsets = [0, 64], sizes = [8, 32], strides = [1, 1]} : vector<8x96xf32> to vector<8x32xf32>
    %101 = vector.extract_strided_slice %83 {offsets = [0, 64], sizes = [8, 32], strides = [1, 1]} : vector<8x96xf32> to vector<8x32xf32>
    %102 = arith.mulf %91, %101 : vector<8x32xf32>
    %103 = arith.addf %100, %102 : vector<8x32xf32>
    %104 = math.tanh %103 : vector<8x32xf32>
    %cst_29 = arith.constant 1.000000e+00 : f32
    %105 = vector.broadcast %cst_29 : f32 to vector<8x32xf32>
    %106 = arith.subf %105, %99 : vector<8x32xf32>
    %107 = arith.mulf %106, %104 : vector<8x32xf32>
    %108 = arith.mulf %99, %78 : vector<8x32xf32>
    %109 = arith.addf %107, %108 : vector<8x32xf32>
    %110 = vector.extract_strided_slice %13 {offsets = [24, 0], sizes = [8, 96], strides = [1, 1]} : vector<64x96xf32> to vector<8x96xf32>
    %111 = arith.truncf %109 : vector<8x32xf32> to vector<8x32xbf16>
    %cst_30 = arith.constant dense<0.000000e+00> : vector<8x96xf32>
    %112 = tpu.matmul %111, %14, %cst_30 {dimension_numbers = #tpu.dot_dimension_numbers<[1], [0], [0], [1], [0, 0, 1, 1], [], []>} : vector<8x32xbf16>, vector<32x96xbf16>, vector<8x96xf32> -> vector<8x96xf32>
    %113 = vector.broadcast %15 : vector<1x96xf32> to vector<8x96xf32>
    %114 = arith.addf %112, %113 : vector<8x96xf32>
    %115 = vector.extract_strided_slice %110 {offsets = [0, 0], sizes = [8, 32], strides = [1, 1]} : vector<8x96xf32> to vector<8x32xf32>
    %116 = vector.extract_strided_slice %114 {offsets = [0, 0], sizes = [8, 32], strides = [1, 1]} : vector<8x96xf32> to vector<8x32xf32>
    %117 = arith.addf %115, %116 : vector<8x32xf32>
    %118 = arith.negf %117 : vector<8x32xf32>
    %119 = math.exp %118 : vector<8x32xf32>
    %cst_31 = arith.constant 1.000000e+00 : f32
    %120 = vector.broadcast %cst_31 : f32 to vector<8x32xf32>
    %121 = arith.addf %120, %119 : vector<8x32xf32>
    %122 = arith.divf %120, %121 : vector<8x32xf32>
    %123 = vector.extract_strided_slice %110 {offsets = [0, 32], sizes = [8, 32], strides = [1, 1]} : vector<8x96xf32> to vector<8x32xf32>
    %124 = vector.extract_strided_slice %114 {offsets = [0, 32], sizes = [8, 32], strides = [1, 1]} : vector<8x96xf32> to vector<8x32xf32>
    %125 = arith.addf %123, %124 : vector<8x32xf32>
    %126 = arith.negf %125 : vector<8x32xf32>
    %127 = math.exp %126 : vector<8x32xf32>
    %cst_32 = arith.constant 1.000000e+00 : f32
    %128 = vector.broadcast %cst_32 : f32 to vector<8x32xf32>
    %129 = arith.addf %128, %127 : vector<8x32xf32>
    %130 = arith.divf %128, %129 : vector<8x32xf32>
    %131 = vector.extract_strided_slice %110 {offsets = [0, 64], sizes = [8, 32], strides = [1, 1]} : vector<8x96xf32> to vector<8x32xf32>
    %132 = vector.extract_strided_slice %114 {offsets = [0, 64], sizes = [8, 32], strides = [1, 1]} : vector<8x96xf32> to vector<8x32xf32>
    %133 = arith.mulf %122, %132 : vector<8x32xf32>
    %134 = arith.addf %131, %133 : vector<8x32xf32>
    %135 = math.tanh %134 : vector<8x32xf32>
    %cst_33 = arith.constant 1.000000e+00 : f32
    %136 = vector.broadcast %cst_33 : f32 to vector<8x32xf32>
    %137 = arith.subf %136, %130 : vector<8x32xf32>
    %138 = arith.mulf %137, %135 : vector<8x32xf32>
    %139 = arith.mulf %130, %109 : vector<8x32xf32>
    %140 = arith.addf %138, %139 : vector<8x32xf32>
    %141 = vector.extract_strided_slice %13 {offsets = [32, 0], sizes = [8, 96], strides = [1, 1]} : vector<64x96xf32> to vector<8x96xf32>
    %142 = arith.truncf %140 : vector<8x32xf32> to vector<8x32xbf16>
    %cst_34 = arith.constant dense<0.000000e+00> : vector<8x96xf32>
    %143 = tpu.matmul %142, %14, %cst_34 {dimension_numbers = #tpu.dot_dimension_numbers<[1], [0], [0], [1], [0, 0, 1, 1], [], []>} : vector<8x32xbf16>, vector<32x96xbf16>, vector<8x96xf32> -> vector<8x96xf32>
    %144 = vector.broadcast %15 : vector<1x96xf32> to vector<8x96xf32>
    %145 = arith.addf %143, %144 : vector<8x96xf32>
    %146 = vector.extract_strided_slice %141 {offsets = [0, 0], sizes = [8, 32], strides = [1, 1]} : vector<8x96xf32> to vector<8x32xf32>
    %147 = vector.extract_strided_slice %145 {offsets = [0, 0], sizes = [8, 32], strides = [1, 1]} : vector<8x96xf32> to vector<8x32xf32>
    %148 = arith.addf %146, %147 : vector<8x32xf32>
    %149 = arith.negf %148 : vector<8x32xf32>
    %150 = math.exp %149 : vector<8x32xf32>
    %cst_35 = arith.constant 1.000000e+00 : f32
    %151 = vector.broadcast %cst_35 : f32 to vector<8x32xf32>
    %152 = arith.addf %151, %150 : vector<8x32xf32>
    %153 = arith.divf %151, %152 : vector<8x32xf32>
    %154 = vector.extract_strided_slice %141 {offsets = [0, 32], sizes = [8, 32], strides = [1, 1]} : vector<8x96xf32> to vector<8x32xf32>
    %155 = vector.extract_strided_slice %145 {offsets = [0, 32], sizes = [8, 32], strides = [1, 1]} : vector<8x96xf32> to vector<8x32xf32>
    %156 = arith.addf %154, %155 : vector<8x32xf32>
    %157 = arith.negf %156 : vector<8x32xf32>
    %158 = math.exp %157 : vector<8x32xf32>
    %cst_36 = arith.constant 1.000000e+00 : f32
    %159 = vector.broadcast %cst_36 : f32 to vector<8x32xf32>
    %160 = arith.addf %159, %158 : vector<8x32xf32>
    %161 = arith.divf %159, %160 : vector<8x32xf32>
    %162 = vector.extract_strided_slice %141 {offsets = [0, 64], sizes = [8, 32], strides = [1, 1]} : vector<8x96xf32> to vector<8x32xf32>
    %163 = vector.extract_strided_slice %145 {offsets = [0, 64], sizes = [8, 32], strides = [1, 1]} : vector<8x96xf32> to vector<8x32xf32>
    %164 = arith.mulf %153, %163 : vector<8x32xf32>
    %165 = arith.addf %162, %164 : vector<8x32xf32>
    %166 = math.tanh %165 : vector<8x32xf32>
    %cst_37 = arith.constant 1.000000e+00 : f32
    %167 = vector.broadcast %cst_37 : f32 to vector<8x32xf32>
    %168 = arith.subf %167, %161 : vector<8x32xf32>
    %169 = arith.mulf %168, %166 : vector<8x32xf32>
    %170 = arith.mulf %161, %140 : vector<8x32xf32>
    %171 = arith.addf %169, %170 : vector<8x32xf32>
    %172 = vector.extract_strided_slice %13 {offsets = [40, 0], sizes = [8, 96], strides = [1, 1]} : vector<64x96xf32> to vector<8x96xf32>
    %173 = arith.truncf %171 : vector<8x32xf32> to vector<8x32xbf16>
    %cst_38 = arith.constant dense<0.000000e+00> : vector<8x96xf32>
    %174 = tpu.matmul %173, %14, %cst_38 {dimension_numbers = #tpu.dot_dimension_numbers<[1], [0], [0], [1], [0, 0, 1, 1], [], []>} : vector<8x32xbf16>, vector<32x96xbf16>, vector<8x96xf32> -> vector<8x96xf32>
    %175 = vector.broadcast %15 : vector<1x96xf32> to vector<8x96xf32>
    %176 = arith.addf %174, %175 : vector<8x96xf32>
    %177 = vector.extract_strided_slice %172 {offsets = [0, 0], sizes = [8, 32], strides = [1, 1]} : vector<8x96xf32> to vector<8x32xf32>
    %178 = vector.extract_strided_slice %176 {offsets = [0, 0], sizes = [8, 32], strides = [1, 1]} : vector<8x96xf32> to vector<8x32xf32>
    %179 = arith.addf %177, %178 : vector<8x32xf32>
    %180 = arith.negf %179 : vector<8x32xf32>
    %181 = math.exp %180 : vector<8x32xf32>
    %cst_39 = arith.constant 1.000000e+00 : f32
    %182 = vector.broadcast %cst_39 : f32 to vector<8x32xf32>
    %183 = arith.addf %182, %181 : vector<8x32xf32>
    %184 = arith.divf %182, %183 : vector<8x32xf32>
    %185 = vector.extract_strided_slice %172 {offsets = [0, 32], sizes = [8, 32], strides = [1, 1]} : vector<8x96xf32> to vector<8x32xf32>
    %186 = vector.extract_strided_slice %176 {offsets = [0, 32], sizes = [8, 32], strides = [1, 1]} : vector<8x96xf32> to vector<8x32xf32>
    %187 = arith.addf %185, %186 : vector<8x32xf32>
    %188 = arith.negf %187 : vector<8x32xf32>
    %189 = math.exp %188 : vector<8x32xf32>
    %cst_40 = arith.constant 1.000000e+00 : f32
    %190 = vector.broadcast %cst_40 : f32 to vector<8x32xf32>
    %191 = arith.addf %190, %189 : vector<8x32xf32>
    %192 = arith.divf %190, %191 : vector<8x32xf32>
    %193 = vector.extract_strided_slice %172 {offsets = [0, 64], sizes = [8, 32], strides = [1, 1]} : vector<8x96xf32> to vector<8x32xf32>
    %194 = vector.extract_strided_slice %176 {offsets = [0, 64], sizes = [8, 32], strides = [1, 1]} : vector<8x96xf32> to vector<8x32xf32>
    %195 = arith.mulf %184, %194 : vector<8x32xf32>
    %196 = arith.addf %193, %195 : vector<8x32xf32>
    %197 = math.tanh %196 : vector<8x32xf32>
    %cst_41 = arith.constant 1.000000e+00 : f32
    %198 = vector.broadcast %cst_41 : f32 to vector<8x32xf32>
    %199 = arith.subf %198, %192 : vector<8x32xf32>
    %200 = arith.mulf %199, %197 : vector<8x32xf32>
    %201 = arith.mulf %192, %171 : vector<8x32xf32>
    %202 = arith.addf %200, %201 : vector<8x32xf32>
    %203 = vector.extract_strided_slice %13 {offsets = [48, 0], sizes = [8, 96], strides = [1, 1]} : vector<64x96xf32> to vector<8x96xf32>
    %204 = arith.truncf %202 : vector<8x32xf32> to vector<8x32xbf16>
    %cst_42 = arith.constant dense<0.000000e+00> : vector<8x96xf32>
    %205 = tpu.matmul %204, %14, %cst_42 {dimension_numbers = #tpu.dot_dimension_numbers<[1], [0], [0], [1], [0, 0, 1, 1], [], []>} : vector<8x32xbf16>, vector<32x96xbf16>, vector<8x96xf32> -> vector<8x96xf32>
    %206 = vector.broadcast %15 : vector<1x96xf32> to vector<8x96xf32>
    %207 = arith.addf %205, %206 : vector<8x96xf32>
    %208 = vector.extract_strided_slice %203 {offsets = [0, 0], sizes = [8, 32], strides = [1, 1]} : vector<8x96xf32> to vector<8x32xf32>
    %209 = vector.extract_strided_slice %207 {offsets = [0, 0], sizes = [8, 32], strides = [1, 1]} : vector<8x96xf32> to vector<8x32xf32>
    %210 = arith.addf %208, %209 : vector<8x32xf32>
    %211 = arith.negf %210 : vector<8x32xf32>
    %212 = math.exp %211 : vector<8x32xf32>
    %cst_43 = arith.constant 1.000000e+00 : f32
    %213 = vector.broadcast %cst_43 : f32 to vector<8x32xf32>
    %214 = arith.addf %213, %212 : vector<8x32xf32>
    %215 = arith.divf %213, %214 : vector<8x32xf32>
    %216 = vector.extract_strided_slice %203 {offsets = [0, 32], sizes = [8, 32], strides = [1, 1]} : vector<8x96xf32> to vector<8x32xf32>
    %217 = vector.extract_strided_slice %207 {offsets = [0, 32], sizes = [8, 32], strides = [1, 1]} : vector<8x96xf32> to vector<8x32xf32>
    %218 = arith.addf %216, %217 : vector<8x32xf32>
    %219 = arith.negf %218 : vector<8x32xf32>
    %220 = math.exp %219 : vector<8x32xf32>
    %cst_44 = arith.constant 1.000000e+00 : f32
    %221 = vector.broadcast %cst_44 : f32 to vector<8x32xf32>
    %222 = arith.addf %221, %220 : vector<8x32xf32>
    %223 = arith.divf %221, %222 : vector<8x32xf32>
    %224 = vector.extract_strided_slice %203 {offsets = [0, 64], sizes = [8, 32], strides = [1, 1]} : vector<8x96xf32> to vector<8x32xf32>
    %225 = vector.extract_strided_slice %207 {offsets = [0, 64], sizes = [8, 32], strides = [1, 1]} : vector<8x96xf32> to vector<8x32xf32>
    %226 = arith.mulf %215, %225 : vector<8x32xf32>
    %227 = arith.addf %224, %226 : vector<8x32xf32>
    %228 = math.tanh %227 : vector<8x32xf32>
    %cst_45 = arith.constant 1.000000e+00 : f32
    %229 = vector.broadcast %cst_45 : f32 to vector<8x32xf32>
    %230 = arith.subf %229, %223 : vector<8x32xf32>
    %231 = arith.mulf %230, %228 : vector<8x32xf32>
    %232 = arith.mulf %223, %202 : vector<8x32xf32>
    %233 = arith.addf %231, %232 : vector<8x32xf32>
    %234 = vector.extract_strided_slice %13 {offsets = [56, 0], sizes = [8, 96], strides = [1, 1]} : vector<64x96xf32> to vector<8x96xf32>
    %235 = arith.truncf %233 : vector<8x32xf32> to vector<8x32xbf16>
    %cst_46 = arith.constant dense<0.000000e+00> : vector<8x96xf32>
    %236 = tpu.matmul %235, %14, %cst_46 {dimension_numbers = #tpu.dot_dimension_numbers<[1], [0], [0], [1], [0, 0, 1, 1], [], []>} : vector<8x32xbf16>, vector<32x96xbf16>, vector<8x96xf32> -> vector<8x96xf32>
    %237 = vector.broadcast %15 : vector<1x96xf32> to vector<8x96xf32>
    %238 = arith.addf %236, %237 : vector<8x96xf32>
    %239 = vector.extract_strided_slice %234 {offsets = [0, 0], sizes = [8, 32], strides = [1, 1]} : vector<8x96xf32> to vector<8x32xf32>
    %240 = vector.extract_strided_slice %238 {offsets = [0, 0], sizes = [8, 32], strides = [1, 1]} : vector<8x96xf32> to vector<8x32xf32>
    %241 = arith.addf %239, %240 : vector<8x32xf32>
    %242 = arith.negf %241 : vector<8x32xf32>
    %243 = math.exp %242 : vector<8x32xf32>
    %cst_47 = arith.constant 1.000000e+00 : f32
    %244 = vector.broadcast %cst_47 : f32 to vector<8x32xf32>
    %245 = arith.addf %244, %243 : vector<8x32xf32>
    %246 = arith.divf %244, %245 : vector<8x32xf32>
    %247 = vector.extract_strided_slice %234 {offsets = [0, 32], sizes = [8, 32], strides = [1, 1]} : vector<8x96xf32> to vector<8x32xf32>
    %248 = vector.extract_strided_slice %238 {offsets = [0, 32], sizes = [8, 32], strides = [1, 1]} : vector<8x96xf32> to vector<8x32xf32>
    %249 = arith.addf %247, %248 : vector<8x32xf32>
    %250 = arith.negf %249 : vector<8x32xf32>
    %251 = math.exp %250 : vector<8x32xf32>
    %cst_48 = arith.constant 1.000000e+00 : f32
    %252 = vector.broadcast %cst_48 : f32 to vector<8x32xf32>
    %253 = arith.addf %252, %251 : vector<8x32xf32>
    %254 = arith.divf %252, %253 : vector<8x32xf32>
    %255 = vector.extract_strided_slice %234 {offsets = [0, 64], sizes = [8, 32], strides = [1, 1]} : vector<8x96xf32> to vector<8x32xf32>
    %256 = vector.extract_strided_slice %238 {offsets = [0, 64], sizes = [8, 32], strides = [1, 1]} : vector<8x96xf32> to vector<8x32xf32>
    %257 = arith.mulf %246, %256 : vector<8x32xf32>
    %258 = arith.addf %255, %257 : vector<8x32xf32>
    %259 = math.tanh %258 : vector<8x32xf32>
    %cst_49 = arith.constant 1.000000e+00 : f32
    %260 = vector.broadcast %cst_49 : f32 to vector<8x32xf32>
    %261 = arith.subf %260, %254 : vector<8x32xf32>
    %262 = arith.mulf %261, %259 : vector<8x32xf32>
    %263 = arith.mulf %254, %233 : vector<8x32xf32>
    %264 = arith.addf %262, %263 : vector<8x32xf32>
    %265 = tpu.concatenate %7, %264 in 1 : vector<8x32xf32>, vector<8x32xf32> -> vector<8x64xf32>
    %266 = arith.truncf %265 : vector<8x64xf32> to vector<8x64xbf16>
    %c0_50 = arith.constant 0 : index
    %c0_51 = arith.constant 0 : index
    %267 = vector.load %arg8[%c0_50, %c0_51] : memref<64x64xbf16, #tpu.memory_space<vmem>>, vector<64x64xbf16>
    %cst_52 = arith.constant dense<0.000000e+00> : vector<8x64xf32>
    %268 = tpu.matmul %266, %267, %cst_52 {dimension_numbers = #tpu.dot_dimension_numbers<[1], [0], [0], [1], [0, 0, 1, 1], [], []>} : vector<8x64xbf16>, vector<64x64xbf16>, vector<8x64xf32> -> vector<8x64xf32>
    %c0_53 = arith.constant 0 : index
    %c0_54 = arith.constant 0 : index
    %269 = vector.load %arg9[%c0_53, %c0_54] : memref<1x64xf32, #tpu.memory_space<vmem>>, vector<1x64xf32>
    %270 = vector.broadcast %269 : vector<1x64xf32> to vector<8x64xf32>
    %271 = arith.addf %268, %270 : vector<8x64xf32>
    %cst_55 = arith.constant 0.000000e+00 : f32
    %272 = vector.broadcast %cst_55 : f32 to vector<8x64xf32>
    %273 = arith.maximumf %271, %272 : vector<8x64xf32>
    %274 = arith.mulf %273, %273 : vector<8x64xf32>
    %cst_56 = arith.constant dense<0.000000e+00> : vector<8xf32>
    %275 = vector.multi_reduction <add>, %274, %cst_56 [1] : vector<8x64xf32> to vector<8xf32>
    %276 = vector.shape_cast %275 : vector<8xf32> to vector<8x1xf32>
    %cst_57 = arith.constant 1.000000e-24 : f32
    %277 = vector.broadcast %cst_57 : f32 to vector<8x1xf32>
    %278 = arith.maximumf %276, %277 : vector<8x1xf32>
    %279 = math.rsqrt %278 : vector<8x1xf32>
    %280 = vector.broadcast %279 : vector<8x1xf32> to vector<8x64xf32>
    %281 = arith.mulf %273, %280 : vector<8x64xf32>
    %c0_58 = arith.constant 0 : index
    %c0_59 = arith.constant 0 : index
    %282 = vector.load %arg10[%c0_58, %c0_59] : memref<8x64xf32, #tpu.memory_space<vmem>>, vector<8x64xf32>
    tpu.vector_store %arg10[%c0_58, %c0_59], %281 {strides = array<i32>} : memref<8x64xf32, #tpu.memory_space<vmem>>, vector<8x64xf32>,
    return
  }
}

</mosaic_0001>

<bundles_post_ra>
// kernel: actrank_forward.1
= control target key start
LH: loop header
LB: loop body
LE: loop exit
PB: predicated region body
PF: predicated region fallthrough
CT: control target
= control target key end

     0   :  { %vm445_vm0 = vcmask 1041408   ;;  %vm432_vm1 = vcmask 31744   ;;  %v1555_v42 = vmov 0.0   ;;  %vm1556_vm2 = vmmov 0   ;;  %s1558_s14 = smov 64   ;;  %s1906_s2 = inlined_call_operand.vmem [shape: bf16[512,32], index: 2, kind: input, shape index: {}]   ;;  %s1907_s0 = inlined_call_operand.vmem [shape: bf16[8,512], index: 0, kind: input, shape index: {}]   ;;  %s1908_s4 = inlined_call_operand.vmem [shape: bf16[4,96], index: 4, kind: input, shape index: {}]   ;;  %s1909_s1 = inlined_call_operand.vmem [shape: bf16[64,4], index: 1, kind: input, shape index: {}]   ;;  %s1910_s6 = inlined_call_operand.vmem [shape: bf16[32,96], index: 6, kind: input, shape index: {}]   ;;  %s1911_s3 = inlined_call_operand.vmem [shape: f32[1,32], index: 3, kind: input, shape index: {}]   ;;  %s1912_s5 = inlined_call_operand.vmem [shape: f32[1,96], index: 5, kind: input, shape index: {}]   ;;  %s1913_s7 = inlined_call_operand.vmem [shape: f32[1,96], index: 7, kind: input, shape index: {}]   ;;  %s1914_s8 = inlined_call_operand.vmem [shape: bf16[64,64], index: 8, kind: input, shape index: {}]   ;;  %s1915_s9 = inlined_call_operand.vmem [shape: f32[1,64], index: 9, kind: input, shape index: {}]   ;;  %s1916_s10 = inlined_call_operand.vmem [shape: f32[8,64], index: 10, kind: output, shape index: {}]  }
   0x1   :  { %v1459_v0 = vld [vmem:[%s1906_s2 + $0x40] sm:$0xff]   ;;  %v1463_v4 = vld [vmem:[%s1906_s2 + $0x48] sm:$0xff]   ;;  %v1467_v8 = vld [vmem:[%s1906_s2 + $0x50] sm:$0xff]   ;;  %v1557_v47 = vmov 0   ;;  %vm537_vm3 = vcmask 261120   ;;  %vm1159_vm4 = vcmask 523264  }
   0x2   :  { %v1460_v1 = vld [vmem:[%s1906_s2 + $0xc0] sm:$0xff]   ;;  %1286 = vmatprep.subr.bf16.mxu0 %v1459_v0  ;;  %v1464_v5 = vld [vmem:[%s1906_s2 + $0xc8] sm:$0xff]   ;;  %v1468_v9 = vld [vmem:[%s1906_s2 + $0xd0] sm:$0xff]  }
   0x3   :  { %v1461_v2 = vld [vmem:[%s1906_s2] sm:$0xff]   ;;  %1308 = vmatprep.subr.bf16.mxu1 %v1460_v1  ;;  %v1465_v6 = vld [vmem:[%s1906_s2 + $0x8] sm:$0xff]   ;;  %v1469_v10 = vld [vmem:[%s1906_s2 + $0x10] sm:$0xff]  }
   0x4   :  { %v1462_v3 = vld [vmem:[%s1906_s2 + $0x80] sm:$0xff]   ;;  %1287 = vmatpush3.bf16.msra.mxu0 %v1461_v2  ;;  %v1466_v7 = vld [vmem:[%s1906_s2 + $0x88] sm:$0xff]   ;;  %v1470_v11 = vld [vmem:[%s1906_s2 + $0x90] sm:$0xff]  }
   0x5   :  { %1309 = vmatpush3.bf16.msra.mxu1 %v1462_v3  ;;  %1288 = vmatprep.subr.bf16.mxu0 %v1463_v4  ;;  %v1471_v12 = vld [vmem:[%s1906_s2 + $0x58] sm:$0xff]   ;;  %v1475_v16 = vld [vmem:[%s1906_s2 + $0x60] sm:$0xff]   ;;  %v1479_v20 = vld [vmem:[%s1906_s2 + $0x68] sm:$0xff]  }
   0x6   :  { %1310 = vmatprep.subr.bf16.mxu1 %v1464_v5  ;;  %v1472_v13 = vld [vmem:[%s1906_s2 + $0xd8] sm:$0xff]   ;;  %v1476_v17 = vld [vmem:[%s1906_s2 + $0xe0] sm:$0xff]   ;;  %v1480_v21 = vld [vmem:[%s1906_s2 + $0xe8] sm:$0xff]  }
   0x7   :  { %v1473_v14 = vld [vmem:[%s1906_s2 + $0x18] sm:$0xff]   ;;  %v1477_v18 = vld [vmem:[%s1906_s2 + $0x20] sm:$0xff]   ;;  %v1481_v22 = vld [vmem:[%s1906_s2 + $0x28] sm:$0xff]  }
   0x8   :  { %1289 = vmatpush3.bf16.msra.mxu0 %v1465_v6  ;;  %v1474_v15 = vld [vmem:[%s1906_s2 + $0x98] sm:$0xff]   ;;  %v1478_v19 = vld [vmem:[%s1906_s2 + $0xa0] sm:$0xff]   ;;  %v1482_v23 = vld [vmem:[%s1906_s2 + $0xa8] sm:$0xff]  }
   0x9   :  { %1311 = vmatpush3.bf16.msra.mxu1 %v1466_v7  ;;  %1290 = vmatprep.subr.bf16.mxu0 %v1467_v8  ;;  %v1483_v24 = vld [vmem:[%s1906_s2 + $0x70] sm:$0xff]   ;;  %v1487_v28 = vld [vmem:[%s1906_s2 + $0x78] sm:$0xff]   ;;  %v36_v32 = vld [vmem:[%s1907_s0] sm:$0xff] }
   0xa   :  { %1312 = vmatprep.subr.bf16.mxu1 %v1468_v9  ;;  %v1484_v25 = vld [vmem:[%s1906_s2 + $0xf0] sm:$0xff]   ;;  %v1488_v29 = vld [vmem:[%s1906_s2 + $0xf8] sm:$0xff]   ;;  %v37_v33 = vld [vmem:[%s1907_s0 + $0x8] sm:$0xff]  ;;  %v1217_v35 = vcombine.low %v36_v32, %v36_v32  ;;  %v1218_v36 = vcombine.high %v36_v32, %v36_v32 }
   0xb   :  { %v1485_v26 = vld [vmem:[%s1906_s2 + $0x30] sm:$0xff]   ;;  %v1489_v30 = vld [vmem:[%s1906_s2 + $0x38] sm:$0xff]   ;;  %v404_v34 = vld [vmem:[%s1908_s4] sm:$0x3]  ;;  %v1219_v37 = vcombine.low %v37_v33, %v37_v33  ;;  %v1220_v38 = vcombine.high %v37_v33, %v37_v33 }
   0xc   :  { %1291 = vmatpush3.bf16.msra.mxu0 %v1469_v10  ;;  %v1486_v27 = vld [vmem:[%s1906_s2 + $0xb0] sm:$0xff]   ;;  %v1490_v31 = vld [vmem:[%s1906_s2 + $0xb8] sm:$0xff]   ;;  %v447_v40 = vsel %vm445_vm0, %v404_v34, 0  ;;  %347 = vmatprep.mubr.bf16.mxu0 %v1218_v36  ;;  %v1499_v41 = vld [vmem:[%s1909_s1] sm:$0xff]  }
   0xd   :  { %1313 = vmatpush3.bf16.msra.mxu1 %v1470_v11  ;;  %1292 = vmatprep.subr.bf16.mxu0 %v1471_v12  ;;  %v1495_v39 = vld [vmem:[%s1909_s1 + $0x10] sm:$0xff]   ;;  %v1496_v43 = vld [vmem:[%s1909_s1 + $0x18] sm:$0xff]   ;;  %v1500_v44 = vld [vmem:[%s1909_s1 + $0x8] sm:$0xff]  }
   0xe   :  { %1314 = vmatprep.subr.bf16.mxu1 %v1472_v13  ;;  %387 = vmatprep.mubr.bf16.mxu1 %v1220_v38  ;;  %v1739_v45 = vld [vmem:[%s1910_s6] sm:$0xff]   ;;  %v1747_v46 = vld [vmem:[%s1910_s6 + $0x8] sm:$0xff]  }
   0xf   :  { %v1216_v50 = vld [vmem:[%s1911_s3] ss:$0 sm:$0xff] }
  0x10   :  { %1293 = vmatpush3.bf16.msra.mxu0 %v1473_v14  ;;  %v1253_v61 = vld [vmem:[%s1912_s5] ss:$0 sm:$0xff] }
  0x11   :  { %1315 = vmatpush3.bf16.msra.mxu1 %v1474_v15  ;;  %1294 = vmatprep.subr.bf16.mxu0 %v1475_v16  ;;  %v1789_v13 = vld [vmem:[%s1913_s7] ss:$0 sm:$0xff]  ;;  %s1559_s7 = smov 96  }
  0x12   :  { %1316 = vmatprep.subr.bf16.mxu1 %v1476_v17 }
  0x14   :  { %1295 = vmatpush3.bf16.msra.mxu0 %v1477_v18 }
  0x15   :  { %1317 = vmatpush3.bf16.msra.mxu1 %v1478_v19  ;;  %1296 = vmatprep.subr.bf16.mxu0 %v1479_v20 }
  0x16   :  { %1318 = vmatprep.subr.bf16.mxu1 %v1480_v21 }
  0x18   :  { %1297 = vmatpush3.bf16.msra.mxu0 %v1481_v22 }
  0x19   :  { %1319 = vmatpush3.bf16.msra.mxu1 %v1482_v23  ;;  %1298 = vmatprep.subr.bf16.mxu0 %v1483_v24 }
  0x1a   :  { %1320 = vmatprep.subr.bf16.mxu1 %v1484_v25 }
  0x1c   :  { %1299 = vmatpush3.bf16.msra.mxu0 %v1485_v26 }
  0x1d   :  { %1321 = vmatpush3.bf16.msra.mxu1 %v1486_v27  ;;  %1300 = vmatprep.subr.bf16.mxu0 %v1487_v28 }
  0x1e   :  { %1322 = vmatprep.subr.bf16.mxu1 %v1488_v29 }
  0x20   :  { %1301 = vmatpush3.bf16.msra.mxu0 %v1489_v30 }
  0x21   :  { %1323 = vmatpush3.bf16.msra.mxu1 %v1490_v31  ;;  %1452 = vmatprep.subr.msk.bf16.mxu0 %vm445_vm0, %v404_v34 }
  0x22   :  { %1453 = vmatprep.subr.msk.bf16.mxu1 %vm445_vm0, %v404_v34 }
  0x23   :  { %348 = vmatmul.mubr.bf16.vlgmr.msra.gmra.mrb[0].mxu0 %v1217_v35 }
  0x24   :  { %388 = vmatmul.mubr.bf16.vlgmr.msra.gmra.mrb[0].mxu1 %v1219_v37  ;;  %1365 = vmatpush3.bf16.msra.mxu0 %v447_v40 }
  0x25   :  { %1451 = vmatpush3.bf16.msra.mxu1 %v447_v40  ;;  %1370 = vmatprep.mubr.msk.bf16.mxu1 %vm432_vm1, %v1495_v39 }
  0x26   :  { %1374 = vmatprep.subr.bf16.mxu1 %v1555_v42  ;;  %1366 = vmatprep.mubr.msk.bf16.mxu0 %vm432_vm1, %v1499_v41 }
  0x27   :  { %1390 = vmatprep.subr.bf16.mxu0 %v1555_v42 }
  0x2b   :  { %1367 = vmatmul.mubr.msk.bf16.vlgmr.msra.gmra.mrb[4].mxu0 %vm432_vm1, %v1500_v44 }
  0x2c   :  { %1371 = vmatmul.mubr.msk.bf16.vlgmr.msra.gmra.mrb[4].mxu1 %vm432_vm1, %v1496_v43  ;;  %1391 = vmatpush3.bf16.msra.mxu0 %v1739_v45 }
  0x2d   :  { %1375 = vmatpush3.bf16.msra.mxu1 %v1739_v45  ;;  %1378 = vmatprep.mubr.msk.bf16.mxu1 %vm1556_vm2, %v1555_v42 }
  0x2e   :  { %1376 = vmatprep.subr.bf16.mxu1 %v1555_v42  ;;  %1392 = vmatprep.subr.bf16.mxu0 %v1555_v42 }
  0x2f   :  { %1394 = vmatprep.mubr.msk.bf16.mxu0 %vm1556_vm2, %v1555_v42 }
  0x30   :  { %1393 = vmatpush3.bf16.msra.mxu0 %v1747_v46 }
  0x31   :  { %1377 = vmatpush3.bf16.msra.mxu1 %v1747_v46  ;;  %1406 = vmatprep.subr.bf16.mxu0 %v1555_v42 }
  0x32   :  { %1382 = vmatprep.subr.bf16.mxu1 %v1555_v42 }
  0x34   :  { %1379 = vmatmul.mubr.bf16.vlgmr.msra.gmra.mrb[8].mxu1 %v1557_v47 }
  0x35   :  { %1383 = vmatpush3.bf16.msra.mxu1 %v1739_v45  ;;  %1386 = vmatprep.mubr.msk.bf16.mxu1 %vm1556_vm2, %v1555_v42 }
  0x36   :  { %1384 = vmatprep.subr.bf16.mxu1 %v1555_v42 }
  0x39   :  { %1385 = vmatpush3.bf16.msra.mxu1 %v1747_v46 }
  0x3a   :  { %1398 = vmatprep.subr.bf16.mxu1 %v1555_v42 }
  0xf6   :  { %v1302_v48 = vpop.f32.mrb[0].mxu0 }
  0xf7   :  { %v1324_v49 = vpop.f32.mrb[0].mxu1  ;;  %v1303_v51 = vpop.f32.mrb[1].mxu0 }
  0xf8   :  { %v1325_v52 = vpop.f32.mrb[1].mxu1  ;;  %v1304_v53 = vadd.f32 %v1303_v51, %v1302_v48  ;;  %v1305_v56 = vpop.f32.mrb[2].mxu0 }
  0xf9   :  { %v1326_v54 = vadd.f32 %v1325_v52, %v1324_v49  ;;  %v1327_v55 = vpop.f32.mrb[2].mxu1  ;;  %v1306_v58 = vpop.f32.mrb[3].mxu0 }
  0xfa   :  { %v1328_v57 = vpop.f32.mrb[3].mxu1  ;;  %v350_v59 = vadd.f32 %v1304_v53, %v1216_v50 }
  0xfc   :  { %v1769_v60 = vadd.f32 %v1326_v54, %v350_v59 }
  0xfe   :  { %v1368_v63 = vpop.f32.mrb[4].mxu0 }
  0xff   :  { %v1372_v62 = vpop.f32.mrb[4].mxu1  ;;  %v1776_v2 = vadd.f32 %v1368_v63, %v1253_v61  ;;  %v483_v3 = vpop.f32.mrb[5].mxu0 }
 0x100   :  { %v1774_v0 = vadd.f32 %v1372_v62, %v1253_v61  ;;  %v499_v1 = vpop.f32.mrb[5].mxu1  ;;  %v1369_v6 = vpop.f32.mrb[6].mxu0  ;;  %v484_v19 = vadd.f32 %v1253_v61, %v483_v3 }
 0x101   :  { %v1778_v4 = vadd.f32 %v1253_v61, %v499_v1  ;;  %v1373_v5 = vpop.f32.mrb[6].mxu1  ;;  %v1782_v9 = vadd.f32 %v1369_v6, %v1253_v61  ;;  %v486_v10 = vpop.f32.mrb[7].mxu0 }
 0x102   :  { %v1780_v7 = vadd.f32 %v1373_v5, %v1253_v61  ;;  %v502_v8 = vpop.f32.mrb[7].mxu1  ;;  %v487_v12 = vadd.f32 %v1253_v61, %v486_v10 }
 0x103   :  { %v1784_v11 = vadd.f32 %v1253_v61, %v502_v8 }
 0x107   :  { %v575_v14 = vpop.f32.mrb[8].mxu1 }
 0x108   :  { %v576_v15 = vadd.f32 %v1789_v13, %v575_v14  ;;  %v1380_v16 = vpop.f32.mrb[9].mxu1 }
 0x109   :  { %v578_v17 = vpop.f32.mrb[10].mxu1 }
 0x10a   :  { %589 = vrot.lane.b32.xlu0 %v576_v15, %s1558_s14  ;;  %v1381_v18 = vpop.f32.mrb[11].mxu1  ;;  %v581_v20 = vadd.f32 %v576_v15, %v484_v19 }
 0x10c   :  { %v1265_v21 = vmul.f32 -1.442695, %v581_v20 }
 0x10e   :  { %1505 = vpow2.f32 %v1265_v21 }
 0x118   :  { %v1506_v22 = vpop.eup %1505 }
 0x119   :  { %v585_v23 = vadd.f32 1.0, %v1506_v22 }
 0x11b   :  { %1507 = vrcp.f32 %v585_v23 }
 0x125   :  { %v1508_v24 = vpop.eup %1507 }
 0x126   :  { %v599_v30 = vsub.f32 1.0, %v1508_v24  ;;  %v605_v32 = vmul.f32 0.0, %v1508_v24 }
 0x17c   :  { %v590_v25 = vpop.permute.xlu0 %589 }
 0x17d   :  { %v592_v26 = vmul.f32 %v1508_v24, %v590_v25 }
 0x17f   :  { %594 = vrot.lane.b32.xlu0 %v592_v26, %s1558_s14 }
 0x1f1   :  { %v595_v27 = vpop.permute.xlu0 %594 }
 0x1f2   :  { %v597_v28 = vadd.f32 %v595_v27, %v484_v19 }
 0x1f4   :  { %1509 = vtanh.f32 %v597_v28 }
 0x1fe   :  { %v1510_v29 = vpop.eup %1509 }
 0x1ff   :  { %601 = vrot.lane.b32.xlu1 %v1510_v29, %s1559_s7 }
 0x271   :  { %v602_v31 = vpop.permute.xlu1 %601 }
 0x272   :  { %v604_v33 = vmul.f32 %v602_v31, %v599_v30 }
 0x274   :  { %v606_v34 = vadd.f32 %v605_v32, %v604_v33 }
 0x276   :  { %v607_v35 = vpack.c.bf16 %v606_v34, %v606_v34 }
 0x278   :  { %609 = vrot.lane.b32.xlu1 %v607_v35, %s1559_s7 }
 0x2ea   :  { %v610_v36 = vpop.permute.xlu1 %609 }
 0x2eb   :  { %1387 = vmatmul.mubr.msk.bf16.vlgmr.msra.gmra.mrb[12].mxu1 %vm537_vm3, %v610_v36 }
 0x2ec   :  { %1399 = vmatpush3.bf16.msra.mxu1 %v1739_v45  ;;  %1402 = vmatprep.mubr.msk.bf16.mxu1 %vm1556_vm2, %v1555_v42 }
 0x2ed   :  { %1400 = vmatprep.subr.bf16.mxu1 %v1555_v42 }
 0x2f0   :  { %1401 = vmatpush3.bf16.msra.mxu1 %v1747_v46 }
 0x2f1   :  { %1414 = vmatprep.subr.bf16.mxu1 %v1555_v42 }
 0x3be   :  { %v648_v37 = vpop.f32.mrb[12].mxu1 }
 0x3bf   :  { %v649_v38 = vadd.f32 %v1789_v13, %v648_v37  ;;  %v1388_v39 = vpop.f32.mrb[13].mxu1 }
 0x3c0   :  { %v651_v40 = vpop.f32.mrb[14].mxu1 }
 0x3c1   :  { %662 = vrot.lane.b32.xlu0 %v649_v38, %s1558_s14  ;;  %v1389_v41 = vpop.f32.mrb[15].mxu1  ;;  %v654_v43 = vadd.f32 %v649_v38, %v487_v12 }
 0x3c3   :  { %v1267_v44 = vmul.f32 -1.442695, %v654_v43 }
 0x3c5   :  { %1511 = vpow2.f32 %v1267_v44 }
 0x3cf   :  { %v1512_v47 = vpop.eup %1511 }
 0x3d0   :  { %v658_v48 = vadd.f32 1.0, %v1512_v47 }
 0x3d2   :  { %1513 = vrcp.f32 %v658_v48 }
 0x3dc   :  { %v1514_v49 = vpop.eup %1513 }
 0x3dd   :  { %v672_v55 = vsub.f32 1.0, %v1514_v49  ;;  %v678_v57 = vmul.f32 %v1514_v49, %v606_v34 }
 0x433   :  { %v663_v50 = vpop.permute.xlu0 %662 }
 0x434   :  { %v665_v51 = vmul.f32 %v1514_v49, %v663_v50 }
 0x436   :  { %667 = vrot.lane.b32.xlu1 %v665_v51, %s1558_s14 }
 0x4a8   :  { %v668_v52 = vpop.permute.xlu1 %667 }
 0x4a9   :  { %v670_v53 = vadd.f32 %v668_v52, %v487_v12 }
 0x4ab   :  { %1515 = vtanh.f32 %v670_v53 }
 0x4b5   :  { %v1516_v54 = vpop.eup %1515 }
 0x4b6   :  { %674 = vrot.lane.b32.xlu0 %v1516_v54, %s1559_s7 }
 0x528   :  { %v675_v56 = vpop.permute.xlu0 %674 }
 0x529   :  { %v677_v58 = vmul.f32 %v675_v56, %v672_v55 }
 0x52b   :  { %v679_v59 = vadd.f32 %v678_v57, %v677_v58 }
 0x52d   :  { %v680_v61 = vpack.c.bf16 %v679_v59, %v679_v59 }
 0x52f   :  { %682 = vrot.lane.b32.xlu1 %v680_v61, %s1559_s7 }
 0x5a1   :  { %v683_v62 = vpop.permute.xlu1 %682 }
 0x5a2   :  { %1395 = vmatmul.mubr.msk.bf16.vlgmr.msra.gmra.mrb[8].mxu0 %vm537_vm3, %v683_v62 }
 0x5a3   :  { %1407 = vmatpush3.bf16.msra.mxu0 %v1739_v45  ;;  %1410 = vmatprep.mubr.msk.bf16.mxu0 %vm1556_vm2, %v1555_v42 }
 0x5a4   :  { %1408 = vmatprep.subr.bf16.mxu0 %v1555_v42 }
 0x5a7   :  { %1409 = vmatpush3.bf16.msra.mxu0 %v1747_v46 }
 0x5a8   :  { %1422 = vmatprep.subr.bf16.mxu0 %v1555_v42 }
 0x675   :  { %v721_v63 = vpop.f32.mrb[8].mxu0 }
 0x676   :  { %v722_v1 = vadd.f32 %v1789_v13, %v721_v63  ;;  %v1396_v3 = vpop.f32.mrb[9].mxu0 }
 0x677   :  { %v724_v5 = vpop.f32.mrb[10].mxu0 }
 0x678   :  { %735 = vrot.lane.b32.xlu0 %v722_v1, %s1558_s14  ;;  %v1397_v6 = vpop.f32.mrb[11].mxu0  ;;  %v727_v8 = vadd.f32 %v722_v1, %v1776_v2 }
 0x67a   :  { %v1269_v10 = vmul.f32 -1.442695, %v727_v8 }
 0x67c   :  { %1517 = vpow2.f32 %v1269_v10 }
 0x686   :  { %v1518_v12 = vpop.eup %1517 }
 0x687   :  { %v731_v14 = vadd.f32 1.0, %v1518_v12 }
 0x689   :  { %1519 = vrcp.f32 %v731_v14 }
 0x693   :  { %v1520_v15 = vpop.eup %1519 }
 0x694   :  { %v745_v21 = vsub.f32 1.0, %v1520_v15  ;;  %v751_v23 = vmul.f32 %v1520_v15, %v679_v59 }
 0x6ea   :  { %v736_v16 = vpop.permute.xlu0 %735 }
 0x6eb   :  { %v738_v17 = vmul.f32 %v1520_v15, %v736_v16 }
 0x6ed   :  { %740 = vrot.lane.b32.xlu1 %v738_v17, %s1558_s14 }
 0x75f   :  { %v741_v18 = vpop.permute.xlu1 %740 }
 0x760   :  { %v743_v19 = vadd.f32 %v741_v18, %v1776_v2 }
 0x762   :  { %1521 = vtanh.f32 %v743_v19 }
 0x76c   :  { %v1522_v20 = vpop.eup %1521 }
 0x76d   :  { %747 = vrot.lane.b32.xlu0 %v1522_v20, %s1559_s7 }
 0x7df   :  { %v748_v22 = vpop.permute.xlu0 %747 }
 0x7e0   :  { %v750_v24 = vmul.f32 %v748_v22, %v745_v21 }
 0x7e2   :  { %v752_v25 = vadd.f32 %v751_v23, %v750_v24 }
 0x7e4   :  { %v753_v26 = vpack.c.bf16 %v752_v25, %v752_v25 }
 0x7e6   :  { %755 = vrot.lane.b32.xlu1 %v753_v26, %s1559_s7 }
 0x858   :  { %v756_v27 = vpop.permute.xlu1 %755 }
 0x859   :  { %1403 = vmatmul.mubr.msk.bf16.vlgmr.msra.gmra.mrb[16].mxu1 %vm537_vm3, %v756_v27 }
 0x85a   :  { %1415 = vmatpush3.bf16.msra.mxu1 %v1739_v45  ;;  %1418 = vmatprep.mubr.msk.bf16.mxu1 %vm1556_vm2, %v1555_v42 }
 0x85b   :  { %1416 = vmatprep.subr.bf16.mxu1 %v1555_v42 }
 0x85e   :  { %1417 = vmatpush3.bf16.msra.mxu1 %v1747_v46 }
 0x85f   :  { %1430 = vmatprep.subr.bf16.mxu1 %v1555_v42 }
 0x92c   :  { %v794_v2 = vpop.f32.mrb[16].mxu1 }
 0x92d   :  { %v795_v28 = vadd.f32 %v1789_v13, %v794_v2  ;;  %v1404_v29 = vpop.f32.mrb[17].mxu1 }
 0x92e   :  { %v797_v30 = vpop.f32.mrb[18].mxu1 }
 0x92f   :  { %808 = vrot.lane.b32.xlu0 %v795_v28, %s1558_s14  ;;  %v1405_v31 = vpop.f32.mrb[19].mxu1  ;;  %v800_v32 = vadd.f32 %v795_v28, %v1782_v9 }
 0x931   :  { %v1271_v33 = vmul.f32 -1.442695, %v800_v32 }
 0x933   :  { %1523 = vpow2.f32 %v1271_v33 }
 0x93d   :  { %v1524_v34 = vpop.eup %1523 }
 0x93e   :  { %v804_v35 = vadd.f32 1.0, %v1524_v34 }
 0x940   :  { %1525 = vrcp.f32 %v804_v35 }
 0x94a   :  { %v1526_v36 = vpop.eup %1525 }
 0x94b   :  { %v818_v43 = vsub.f32 1.0, %v1526_v36  ;;  %v824_v47 = vmul.f32 %v1526_v36, %v752_v25 }
 0x9a1   :  { %v809_v37 = vpop.permute.xlu0 %808 }
 0x9a2   :  { %v811_v38 = vmul.f32 %v1526_v36, %v809_v37 }
 0x9a4   :  { %813 = vrot.lane.b32.xlu1 %v811_v38, %s1558_s14 }
 0xa16   :  { %v814_v39 = vpop.permute.xlu1 %813 }
 0xa17   :  { %v816_v40 = vadd.f32 %v814_v39, %v1782_v9 }
 0xa19   :  { %1527 = vtanh.f32 %v816_v40 }
 0xa23   :  { %v1528_v41 = vpop.eup %1527 }
 0xa24   :  { %820 = vrot.lane.b32.xlu0 %v1528_v41, %s1559_s7 }
 0xa96   :  { %v821_v44 = vpop.permute.xlu0 %820 }
 0xa97   :  { %v823_v48 = vmul.f32 %v821_v44, %v818_v43 }
 0xa99   :  { %v825_v49 = vadd.f32 %v824_v47, %v823_v48 }
 0xa9b   :  { %v826_v50 = vpack.c.bf16 %v825_v49, %v825_v49 }
 0xa9d   :  { %828 = vrot.lane.b32.xlu1 %v826_v50, %s1559_s7 }
 0xb0f   :  { %v829_v51 = vpop.permute.xlu1 %828 }
 0xb10   :  { %1411 = vmatmul.mubr.msk.bf16.vlgmr.msra.gmra.mrb[12].mxu0 %vm537_vm3, %v829_v51 }
 0xb11   :  { %1423 = vmatpush3.bf16.msra.mxu0 %v1739_v45  ;;  %1426 = vmatprep.mubr.msk.bf16.mxu0 %vm1556_vm2, %v1555_v42 }
 0xb12   :  { %1424 = vmatprep.subr.bf16.mxu0 %v1555_v42 }
 0xb15   :  { %1425 = vmatpush3.bf16.msra.mxu0 %v1747_v46 }
 0xb16   :  { %1438 = vmatprep.subr.bf16.mxu0 %v1555_v42 }
 0xbe3   :  { %v867_v9 = vpop.f32.mrb[12].mxu0 }
 0xbe4   :  { %v868_v52 = vadd.f32 %v1789_v13, %v867_v9  ;;  %v1412_v53 = vpop.f32.mrb[13].mxu0 }
 0xbe5   :  { %v870_v54 = vpop.f32.mrb[14].mxu0 }
 0xbe6   :  { %881 = vrot.lane.b32.xlu0 %v868_v52, %s1558_s14  ;;  %v1413_v55 = vpop.f32.mrb[15].mxu0  ;;  %v873_v56 = vadd.f32 %v868_v52, %v1778_v4 }
 0xbe8   :  { %v1273_v57 = vmul.f32 -1.442695, %v873_v56 }
 0xbea   :  { %1529 = vpow2.f32 %v1273_v57 }
 0xbf4   :  { %v1530_v58 = vpop.eup %1529 }
 0xbf5   :  { %v877_v59 = vadd.f32 1.0, %v1530_v58 }
 0xbf7   :  { %1531 = vrcp.f32 %v877_v59 }
 0xc01   :  { %v1532_v61 = vpop.eup %1531 }
 0xc02   :  { %v891_v6 = vsub.f32 1.0, %v1532_v61  ;;  %v897_v10 = vmul.f32 %v1532_v61, %v825_v49 }
 0xc58   :  { %v882_v62 = vpop.permute.xlu0 %881 }
 0xc59   :  { %v884_v63 = vmul.f32 %v1532_v61, %v882_v62 }
 0xc5b   :  { %886 = vrot.lane.b32.xlu1 %v884_v63, %s1558_s14 }
 0xccd   :  { %v887_v1 = vpop.permute.xlu1 %886 }
 0xcce   :  { %v889_v3 = vadd.f32 %v887_v1, %v1778_v4 }
 0xcd0   :  { %1533 = vtanh.f32 %v889_v3 }
 0xcda   :  { %v1534_v5 = vpop.eup %1533 }
 0xcdb   :  { %893 = vrot.lane.b32.xlu0 %v1534_v5, %s1559_s7 }
 0xd4d   :  { %v894_v8 = vpop.permute.xlu0 %893 }
 0xd4e   :  { %v896_v12 = vmul.f32 %v894_v8, %v891_v6 }
 0xd50   :  { %v898_v14 = vadd.f32 %v897_v10, %v896_v12  ;;  %v1502_v12 = vld [vmem:[%s1914_s8 + $0x8] sm:$0xff]  }
 0xd52   :  { %v899_v15 = vpack.c.bf16 %v898_v14, %v898_v14 }
 0xd54   :  { %901 = vrot.lane.b32.xlu1 %v899_v15, %s1559_s7 }
 0xdc6   :  { %v902_v16 = vpop.permute.xlu1 %901 }
 0xdc7   :  { %1419 = vmatmul.mubr.msk.bf16.vlgmr.msra.gmra.mrb[20].mxu1 %vm537_vm3, %v902_v16 }
 0xdc8   :  { %1431 = vmatpush3.bf16.msra.mxu1 %v1739_v45  ;;  %1434 = vmatprep.mubr.msk.bf16.mxu1 %vm1556_vm2, %v1555_v42 }
 0xdc9   :  { %1432 = vmatprep.subr.bf16.mxu1 %v1555_v42 }
 0xdcc   :  { %1433 = vmatpush3.bf16.msra.mxu1 %v1747_v46 }
 0xe9a   :  { %v940_v4 = vpop.f32.mrb[20].mxu1 }
 0xe9b   :  { %v941_v17 = vadd.f32 %v1789_v13, %v940_v4  ;;  %v1420_v18 = vpop.f32.mrb[21].mxu1  ;;  %v1504_v4 = vld [vmem:[%s1914_s8 + $0x18] sm:$0xff]  }
 0xe9c   :  { %v943_v19 = vpop.f32.mrb[22].mxu1 }
 0xe9d   :  { %954 = vrot.lane.b32.xlu0 %v941_v17, %s1558_s14  ;;  %v1421_v20 = vpop.f32.mrb[23].mxu1  ;;  %v946_v21 = vadd.f32 %v941_v17, %v1784_v11 }
 0xe9f   :  { %v1275_v22 = vmul.f32 -1.442695, %v946_v21 }
 0xea1   :  { %1535 = vpow2.f32 %v1275_v22  ;;  %v395_v22 = vmax.f32 %v1769_v60, 0.0 }
 0xeab   :  { %v1536_v45 = vpop.eup %1535 }
 0xeac   :  { %v950_v23 = vadd.f32 1.0, %v1536_v45 }
 0xeae   :  { %1537 = vrcp.f32 %v950_v23  ;;  %v1280_v23 = vld [vmem:[%s1915_s9] ss:$0 sm:$0xff] }
 0xeb8   :  { %v1538_v24 = vpop.eup %1537 }
 0xeb9   :  { %v964_v28 = vsub.f32 1.0, %v1538_v24  ;;  %v970_v30 = vmul.f32 %v1538_v24, %v898_v14  ;;  %v1503_v14 = vld [vmem:[%s1914_s8 + $0x10] sm:$0xff]  }
 0xf0f   :  { %v955_v25 = vpop.permute.xlu0 %954 }
 0xf10   :  { %v957_v26 = vmul.f32 %v1538_v24, %v955_v25 }
 0xf12   :  { %959 = vrot.lane.b32.xlu1 %v957_v26, %s1558_s14 }
 0xf84   :  { %v960_v46 = vpop.permute.xlu1 %959 }
 0xf85   :  { %v962_v27 = vadd.f32 %v960_v46, %v1784_v11 }
 0xf87   :  { %1539 = vtanh.f32 %v962_v27 }
 0xf91   :  { %v1540_v2 = vpop.eup %1539 }
 0xf92   :  { %966 = vrot.lane.b32.xlu0 %v1540_v2, %s1559_s7 }
0x1004   :  { %v967_v29 = vpop.permute.xlu0 %966 }
0x1005   :  { %v969_v31 = vmul.f32 %v967_v29, %v964_v28 }
0x1007   :  { %v971_v32 = vadd.f32 %v970_v30, %v969_v31 }
0x1009   :  { %v972_v33 = vpack.c.bf16 %v971_v32, %v971_v32 }
0x100b   :  { %974 = vrot.lane.b32.xlu1 %v972_v33, %s1559_s7 }
0x107d   :  { %v975_v34 = vpop.permute.xlu1 %974 }
0x107e   :  { %1427 = vmatmul.mubr.msk.bf16.vlgmr.msra.gmra.mrb[16].mxu0 %vm537_vm3, %v975_v34 }
0x107f   :  { %1446 = vmatprep.mubr.msk.bf16.mxu0 %vm1556_vm2, %v1555_v42 }
0x1151   :  { %v1013_v35 = vpop.f32.mrb[16].mxu0 }
0x1152   :  { %v1014_v11 = vadd.f32 %v1789_v13, %v1013_v35  ;;  %v1428_v36 = vpop.f32.mrb[17].mxu0 }
0x1153   :  { %v1016_v37 = vpop.f32.mrb[18].mxu0 }
0x1154   :  { %1027 = vrot.lane.b32.xlu0 %v1014_v11, %s1558_s14  ;;  %v1429_v38 = vpop.f32.mrb[19].mxu0  ;;  %v1019_v39 = vadd.f32 %v1014_v11, %v1774_v0 }
0x1156   :  { %v1277_v40 = vmul.f32 -1.442695, %v1019_v39 }
0x1158   :  { %1541 = vpow2.f32 %v1277_v40 }
0x1162   :  { %v1542_v41 = vpop.eup %1541 }
0x1163   :  { %v1023_v43 = vadd.f32 1.0, %v1542_v41 }
0x1165   :  { %1543 = vrcp.f32 %v1023_v43 }
0x116f   :  { %v1544_v44 = vpop.eup %1543 }
0x1170   :  { %v1037_v9 = vsub.f32 1.0, %v1544_v44  ;;  %v1043_v53 = vmul.f32 %v1544_v44, %v971_v32 }
0x11c6   :  { %v1028_v47 = vpop.permute.xlu0 %1027 }
0x11c7   :  { %v1030_v48 = vmul.f32 %v1544_v44, %v1028_v47 }
0x11c9   :  { %1032 = vrot.lane.b32.xlu1 %v1030_v48, %s1558_s14 }
0x123b   :  { %v1033_v49 = vpop.permute.xlu1 %1032 }
0x123c   :  { %v1035_v50 = vadd.f32 %v1033_v49, %v1774_v0 }
0x123e   :  { %1545 = vtanh.f32 %v1035_v50 }
0x1248   :  { %v1546_v51 = vpop.eup %1545 }
0x1249   :  { %1039 = vrot.lane.b32.xlu0 %v1546_v51, %s1559_s7 }
0x12bb   :  { %v1040_v52 = vpop.permute.xlu0 %1039 }
0x12bc   :  { %v1042_v54 = vmul.f32 %v1040_v52, %v1037_v9 }
0x12be   :  { %v1044_v55 = vadd.f32 %v1043_v53, %v1042_v54 }
0x12c0   :  { %v1045_v56 = vpack.c.bf16 %v1044_v55, %v1044_v55 }
0x12c2   :  { %1047 = vrot.lane.b32.xlu1 %v1045_v56, %s1559_s7 }
0x1334   :  { %v1048_v57 = vpop.permute.xlu1 %1047 }
0x1335   :  { %1435 = vmatmul.mubr.msk.bf16.vlgmr.msra.gmra.mrb[24].mxu1 %vm537_vm3, %v1048_v57 }
0x1408   :  { %v1086_v58 = vpop.f32.mrb[24].mxu1 }
0x1409   :  { %v1087_v59 = vadd.f32 %v1789_v13, %v1086_v58  ;;  %v1436_v61 = vpop.f32.mrb[25].mxu1  ;;  %v1501_v13 = vld [vmem:[%s1914_s8] sm:$0xff]  }
0x140a   :  { %v1089_v0 = vpop.f32.mrb[26].mxu1  ;;  %1439 = vmatpush3.bf16.msra.mxu0 %v1501_v13 }
0x140b   :  { %1100 = vrot.lane.b32.xlu0 %v1087_v59, %s1558_s14  ;;  %v1437_v62 = vpop.f32.mrb[27].mxu1  ;;  %v1092_v63 = vadd.f32 %v1087_v59, %v1780_v7  ;;  %1440 = vmatprep.subr.bf16.mxu0 %v1555_v42 }
0x140d   :  { %v1279_v1 = vmul.f32 -1.442695, %v1092_v63 }
0x140e   :  { %1441 = vmatpush3.bf16.msra.mxu0 %v1502_v12 }
0x140f   :  { %1547 = vpow2.f32 %v1279_v1  ;;  %1442 = vmatprep.subr.bf16.mxu0 %v1555_v42 }
0x1412   :  { %1443 = vmatpush3.bf16.msra.mxu0 %v1503_v14 }
0x1413   :  { %1444 = vmatprep.subr.bf16.mxu0 %v1555_v42 }
0x1416   :  { %1445 = vmatpush3.bf16.msra.mxu0 %v1504_v4 }
0x1419   :  { %v1548_v3 = vpop.eup %1547 }
0x141a   :  { %v1096_v5 = vadd.f32 1.0, %v1548_v3 }
0x141c   :  { %1549 = vrcp.f32 %v1096_v5 }
0x1426   :  { %v1550_v6 = vpop.eup %1549 }
0x1427   :  { %v1110_v18 = vsub.f32 1.0, %v1550_v6  ;;  %v1116_v20 = vmul.f32 %v1550_v6, %v1044_v55 }
0x147d   :  { %v1101_v8 = vpop.permute.xlu0 %1100 }
0x147e   :  { %v1103_v10 = vmul.f32 %v1550_v6, %v1101_v8 }
0x1480   :  { %1105 = vrot.lane.b32.xlu1 %v1103_v10, %s1558_s14 }
0x14f2   :  { %v1106_v15 = vpop.permute.xlu1 %1105 }
0x14f3   :  { %v1108_v16 = vadd.f32 %v1106_v15, %v1780_v7 }
0x14f5   :  { %1551 = vtanh.f32 %v1108_v16 }
0x14ff   :  { %v1552_v17 = vpop.eup %1551 }
0x1500   :  { %1112 = vrot.lane.b32.xlu0 %v1552_v17, %s1559_s7 }
0x1572   :  { %v1113_v19 = vpop.permute.xlu0 %1112 }
0x1573   :  { %v1115_v21 = vmul.f32 %v1113_v19, %v1110_v18 }
0x1575   :  { %v1117_v45 = vadd.f32 %v1116_v20, %v1115_v21 }
0x1577   :  { %v1118_v7 = vsel %vm537_vm3, %v395_v22, %v1117_v45 }
0x1578   :  { %v1119_v42 = vpack.c.bf16 %v1118_v7, %v1118_v7 }
0x157a   :  { %1447 = vmatmul.mubr.msk.bf16.vlgmr.msra.gmra.mrb[20].mxu0 %vm1159_vm4, %v1119_v42 }
0x164d   :  { %v1197_v24 = vpop.f32.mrb[20].mxu0 }
0x164e   :  { %v1198_v25 = vadd.f32 %v1280_v23, %v1197_v24  ;;  %v1448_v26 = vpop.f32.mrb[21].mxu0 }
0x164f   :  { %v1200_v46 = vpop.f32.mrb[22].mxu0 }
0x1650   :  { %v1203_v27 = vmax.f32 %v1198_v25, 0.0  ;;  %v1449_v2 = vpop.f32.mrb[23].mxu0 }
0x1652   :  { %v1204_v28 = vmul.f32 %v1203_v27, %v1203_v27 }
0x1654   :  { %v1205_v60 = vsel %vm1159_vm4, %v1204_v28, 0.0 }
0x1655   :  { %1206 = vadd.xlane.f32.xlu1 %v1205_v60 }
0x16e2   :  { %v1207_v29 = vpop.xlane.xlu1 %1206 }
0x16e3   :  { %v1208_v30 = vmax.f32 %v1207_v29, 1e-24 }
0x16e5   :  { %1553 = vrsqrt.f32 %v1208_v30 }
0x16ef   :  { %v1554_v31 = vpop.eup %1553 }
0x16f0   :  { %v1210_v32 = vmul.f32 %v1554_v31, %v1203_v27 }
0x16f2   :  { %1211 = vst.msk [vmem:[%s1916_s10] sm:$0xff] %vm1159_vm4, %v1210_v32 }

</bundles_post_ra>
